<compile_context>
chip_gen: v7x
topology: tpu7x:2x2x1
jax: 0.10.0
libtpu: 0.0.40
codegen_flags: <defaults>
</compile_context>

<pallas_src>
import functools
import math

import jax
import jax.numpy as jnp
from jax.experimental import pallas as pl
from jax.experimental.pallas import tpu as pltpu

NUM_GROUPS = 32
EPS = 1e-5


# --------------------------------------------------------------------------- #
# Kernel 1a: GroupNorm statistics (tiled over HW)                              #
# --------------------------------------------------------------------------- #
def gn_stats_kernel(x_ref, gamma_ref, beta_ref, gmap_ref, gmapt_ref,
                    scale_ref, shift_ref, csum_sc, csq_sc, *, inv_cnt):
    hi = pl.program_id(1)

    @pl.when(hi == 0)
    def _init():
        csum_sc[...] = jnp.zeros(csum_sc.shape, csum_sc.dtype)
        csq_sc[...] = jnp.zeros(csq_sc.shape, csq_sc.dtype)

    x = x_ref[0]                                            # (t_hw, c) f32
    csum_sc[...] += jnp.sum(x, axis=0, keepdims=True)       # per-channel sum
    csq_sc[...] += jnp.sum(x * x, axis=0, keepdims=True)    # per-channel sumsq

    @pl.when(hi == pl.num_programs(1) - 1)
    def _finalize():
        # channels -> groups via hoisted one-hot map (tiny matmuls, once per batch).
        gmean = jnp.dot(csum_sc[...], gmap_ref[...],
                        preferred_element_type=jnp.float32) * inv_cnt     # (1, G)
        gex2 = jnp.dot(csq_sc[...], gmap_ref[...],
                       preferred_element_type=jnp.float32) * inv_cnt      # (1, G)
        grstd = jax.lax.rsqrt(gex2 - gmean * gmean + EPS)                 # (1, G)
        # groups -> channels
        cmean = jnp.dot(gmean, gmapt_ref[...], preferred_element_type=jnp.float32)
        crstd = jnp.dot(grstd, gmapt_ref[...], preferred_element_type=jnp.float32)
        scale = gamma_ref[...] * crstd                     # (1, c)
        shift = beta_ref[...] - cmean * scale              # (1, c)
        scale_ref[0] = scale
        shift_ref[0] = shift


# --------------------------------------------------------------------------- #
# Kernel 1b: apply GroupNorm + fused QKV projection (tiled over HW)            #
# --------------------------------------------------------------------------- #
def gn_apply_qkv_kernel(x_ref, scale_ref, shift_ref, wqkv_ref, bqkv_ref,
                        q_ref, k_ref, v_ref):
    x = x_ref[0]                                           # (t_hw, c) f32
    xn = x * scale_ref[0] + shift_ref[0]                   # GroupNorm affine, f32

    c = q_ref.shape[-1]
    cdt = wqkv_ref.dtype
    # Single fused bf16 MXU matmul against (c, 3c); 1/sqrt(c) already folded into Q cols.
    qkv = jnp.dot(xn.astype(cdt), wqkv_ref[...],
                  preferred_element_type=jnp.float32) + bqkv_ref[...]     # (t_hw, 3c) f32
    q_ref[0] = qkv[:, :c].astype(q_ref.dtype)
    k_ref[0] = qkv[:, c:2 * c].astype(k_ref.dtype)
    v_ref[0] = qkv[:, 2 * c:].astype(v_ref.dtype)


# --------------------------------------------------------------------------- #
# Kernel 2: attention (K/V resident) + output projection + residual            #
# --------------------------------------------------------------------------- #
def attn_out_kernel(q_ref, k_ref, v_ref, res_ref, wo_ref, bo_ref, out_ref):
    q = q_ref[0]                       # (tq, c) compute dtype, carries 1/sqrt(c)
    k = k_ref[0]                       # (hw, c) resident in VMEM across q tiles
    v = v_ref[0]                       # (hw, c)

    # scores for this q tile against all keys; softmax kept in f32.
    s = jax.lax.dot_general(q, k, (((1,), (1,)), ((), ())),
                            preferred_element_type=jnp.float32)        # (tq, hw) f32
    m = jnp.max(s, axis=-1, keepdims=True)
    p = jnp.exp(s - m)
    l = jnp.sum(p, axis=-1, keepdims=True)

    o = jnp.dot(p.astype(v.dtype), v, preferred_element_type=jnp.float32)  # (tq, c) f32
    o = o / l

    y = jnp.dot(o.astype(wo_ref.dtype), wo_ref[...],
                preferred_element_type=jnp.float32) + bo_ref[...]
    out_ref[0] = (y + res_ref[0]).astype(out_ref.dtype)
    # TODO(synk): for very large HW where resident K/V (+ the (tq, HW) score tile) no
    # longer fit VMEM, fall back to a kv-tiled online-softmax (flash) variant.


# --------------------------------------------------------------------------- #
# Wrapper                                                                      #
# --------------------------------------------------------------------------- #
def _pick_block(total, target):
    """Largest multiple of 8 that divides `total` and is <= target, else `total`."""
    t = min(target, total)
    if t >= total:
        return total
    best = 0
    d = 8
    while d <= t:
        if total % d == 0:
            best = d
        d += 8
    return best if best > 0 else total


def _vmem_limit_bytes():
    # Raise the scoped-VMEM limit (defaults are 16/32 MiB) but stay below the
    # physical capacity of the current generation (64 MiB on v7x).
    try:
        cap = int(pltpu.get_tpu_info().vmem_capacity_bytes)
        if cap > 0:
            return (cap * 3) // 4
    except Exception:
        pass
    return 48 * 1024 * 1024


def vae_attention_block(x_nchw, params, *, block_hw=512, block_q=256,
                        compute_dtype=jnp.bfloat16):
    """GroupNorm(32, C) + single-head self-attention over spatial tokens + residual.

    bf16 MXU inputs by default (stats / softmax / accumulators stay f32); pass
    compute_dtype=jnp.float32 for strict parity with the PyTorch reference.
    """
    gamma, beta, wq, bq, wk, bk, wv, bv, wo, bo = params
    n, c, h, w = x_nchw.shape
    hw = h * w
    assert c % NUM_GROUPS == 0, "channels must be divisible by 32 (GroupNorm groups)"
    gs = c // NUM_GROUPS

    # Token-major layout, done once in XLA (no in-kernel activation transposes).
    x_tokens = jnp.transpose(x_nchw.reshape(n, c, hw), (0, 2, 1))    # (n, hw, c) f32

    # Fold softmax scale into the Q projection; fuse + pre-transpose QKV weights.
    attn_scale = 1.0 / math.sqrt(c)
    w_qkv_t = jnp.concatenate([(wq * attn_scale).T, wk.T, wv.T], axis=1)   # (c, 3c)
    b_qkv = jnp.concatenate([bq * attn_scale, bk, bv]).reshape(1, 3 * c)   # (1, 3c) f32
    wo_t = wo.T                                                            # (c, c)

    # One-hot channel<->group maps, built once in XLA and passed as tiny inputs
    # (hoisted out of the kernel; no per-step iota/compare on the VPU).
    ch = jnp.arange(c, dtype=jnp.int32)
    grp = jnp.arange(NUM_GROUPS, dtype=jnp.int32)
    gmap = (ch[:, None] // gs == grp[None, :]).astype(jnp.float32)         # (c, G)
    gmap_t = gmap.T                                                        # (G, c)

    block_hw = _pick_block(hw, block_hw)
    block_q = _pick_block(hw, block_q)
    n_hw = hw // block_hw
    n_q = hw // block_q
    inv_cnt = 1.0 / float(gs * hw)
    vmem_limit = _vmem_limit_bytes()

    # ---- Kernel 1a: GroupNorm statistics (bounded VMEM regardless of HW) ----
    gn_scale, gn_shift = pl.pallas_call(
        functools.partial(gn_stats_kernel, inv_cnt=inv_cnt),
        out_shape=[jax.ShapeDtypeStruct((n, 1, c), jnp.float32)] * 2,
        grid=(n, n_hw),
        in_specs=[
            pl.BlockSpec((1, block_hw, c), lambda b, hi: (b, hi, 0)),   # x tokens
            pl.BlockSpec((1, c), lambda b, hi: (0, 0)),                 # gamma
            pl.BlockSpec((1, c), lambda b, hi: (0, 0)),                 # beta
            pl.BlockSpec((c, NUM_GROUPS), lambda b, hi: (0, 0)),        # chan->group map
            pl.BlockSpec((NUM_GROUPS, c), lambda b, hi: (0, 0)),        # group->chan map
        ],
        out_specs=[pl.BlockSpec((1, 1, c), lambda b, hi: (b, 0, 0))] * 2,
        scratch_shapes=[pltpu.VMEM((1, c), jnp.float32),
                        pltpu.VMEM((1, c), jnp.float32)],
        compiler_params=pltpu.CompilerParams(
            dimension_semantics=("parallel", "arbitrary"),
            vmem_limit_bytes=vmem_limit),
    )(x_tokens, gamma.reshape(1, c), beta.reshape(1, c), gmap, gmap_t)

    # ---- Kernel 1b: apply GroupNorm + fused QKV projection (bf16 outputs) ----
    # TODO(synk): pipeline_mode=pl.Buffered(1) on the grid-invariant weight specs would
    # save one weight buffer of VMEM headroom on v7x.
    q, k, v = pl.pallas_call(
        gn_apply_qkv_kernel,
        out_shape=[jax.ShapeDtypeStruct((n, hw, c), compute_dtype)] * 3,
        grid=(n, n_hw),
        in_specs=[
            pl.BlockSpec((1, block_hw, c), lambda b, hi: (b, hi, 0)),   # x tokens
            pl.BlockSpec((1, 1, c), lambda b, hi: (b, 0, 0)),           # GN scale
            pl.BlockSpec((1, 1, c), lambda b, hi: (b, 0, 0)),           # GN shift
            pl.BlockSpec((c, 3 * c), lambda b, hi: (0, 0)),             # fused Wqkv^T
            pl.BlockSpec((1, 3 * c), lambda b, hi: (0, 0)),             # fused bqkv
        ],
        out_specs=[pl.BlockSpec((1, block_hw, c), lambda b, hi: (b, hi, 0))] * 3,
        compiler_params=pltpu.CompilerParams(
            dimension_semantics=("parallel", "parallel"),
            vmem_limit_bytes=vmem_limit),
    )(x_tokens, gn_scale, gn_shift, w_qkv_t.astype(compute_dtype), b_qkv)

    # ---- Kernel 2: attention with VMEM-resident K/V + out_proj + residual ----
    # K/V index_maps depend only on the batch index, so they are DMA'd from HBM once
    # per batch element and reused across all q tiles (no per-q-tile K/V re-read).
    y_tokens = pl.pallas_call(
        attn_out_kernel,
        out_shape=jax.ShapeDtypeStruct((n, hw, c), x_tokens.dtype),
        grid=(n, n_q),
        in_specs=[
            pl.BlockSpec((1, block_q, c), lambda b, qi: (b, qi, 0)),    # q tile
            pl.BlockSpec((1, hw, c), lambda b, qi: (b, 0, 0)),          # K (resident)
            pl.BlockSpec((1, hw, c), lambda b, qi: (b, 0, 0)),          # V (resident)
            pl.BlockSpec((1, block_q, c), lambda b, qi: (b, qi, 0)),    # residual
            pl.BlockSpec((c, c), lambda b, qi: (0, 0)),                 # Wo^T
            pl.BlockSpec((1, c), lambda b, qi: (0, 0)),                 # bo
        ],
        out_specs=pl.BlockSpec((1, block_q, c), lambda b, qi: (b, qi, 0)),
        compiler_params=pltpu.CompilerParams(
            dimension_semantics=("parallel", "parallel"),
            vmem_limit_bytes=vmem_limit),
    )(q, k, v, x_tokens, wo_t.astype(compute_dtype), bo.reshape(1, c))

    # Back to NCHW (once, in XLA).
    return jnp.transpose(y_tokens, (0, 2, 1)).reshape(n, c, h, w)


# --------------------------------------------------------------------------- #
# Pure-JAX reference (mirrors the PyTorch forward)                             #
# --------------------------------------------------------------------------- #
def reference(x_nchw, params):
    gamma, beta, wq, bq, wk, bk, wv, bv, wo, bo = params
    n, c, h, w = x_nchw.shape
    residue = x_nchw
    xg = x_nchw.reshape(n, NUM_GROUPS, (c // NUM_GROUPS) * h * w)
    mean = jnp.mean(xg, axis=-1, keepdims=True)
    var = jnp.mean((xg - mean) ** 2, axis=-1, keepdims=True)
    xn = ((xg - mean) / jnp.sqrt(var + EPS)).reshape(n, c, h, w)
    xn = xn * gamma[None, :, None, None] + beta[None, :, None, None]
    xt = xn.reshape(n, c, h * w).transpose(0, 2, 1)          # (n, hw, c)
    q = xt @ wq.T + bq
    k = xt @ wk.T + bk
    v = xt @ wv.T + bv
    scores = (q @ k.transpose(0, 2, 1)) / math.sqrt(c)
    p = jax.nn.softmax(scores, axis=-1)
    o = p @ v
    y = o @ wo.T + bo
    y = y.transpose(0, 2, 1).reshape(n, c, h, w)
    return y + residue


def init_params(key, c):
    ks = jax.random.split(key, 5)
    gamma = jnp.ones((c,), jnp.float32)          # PyTorch GroupNorm affine defaults
    beta = jnp.zeros((c,), jnp.float32)
    w_in = 0.02 * jax.random.normal(ks[0], (3 * c, c), jnp.float32)
    b_in = 0.02 * jax.random.normal(ks[1], (3 * c,), jnp.float32)
    wq, wk, wv = w_in[:c], w_in[c:2 * c], w_in[2 * c:]
    bq, bk, bv = b_in[:c], b_in[c:2 * c], b_in[2 * c:]
    wo = 0.02 * jax.random.normal(ks[2], (c, c), jnp.float32)
    bo = 0.02 * jax.random.normal(ks[3], (c,), jnp.float32)
    return (gamma, beta, wq, bq, wk, bk, wv, bv, wo, bo)


if __name__ == "__main__":
    key = jax.random.PRNGKey(0)
    kx, kp = jax.random.split(key)

    N, C, H, W = 2, 32, 8, 8        # C must be divisible by 32 (GroupNorm groups)
    x = jax.random.normal(kx, (N, C, H, W), jnp.float32)
    params = init_params(kp, C)

    ref = reference(x, params)

    # Default bf16 MXU path; small tiles so HW tiling / stats accumulation / multiple
    # q tiles are all exercised (hw=64 -> 2 hw tiles, 2 q tiles per batch element).
    out_bf16 = vae_attention_block(x, params, block_hw=32, block_q=32,
                                   compute_dtype=jnp.bfloat16)
    out_bf16 = jax.block_until_ready(out_bf16)
    assert out_bf16.shape == (N, C, H, W)
    err_bf16 = jnp.max(jnp.abs(out_bf16 - ref))
    assert jnp.allclose(out_bf16, ref, atol=3e-2, rtol=3e-2), \
        f"bf16 mismatch: max abs err {err_bf16}"

    # f32 compute path: tight parity with the reference.
    out_f32 = vae_attention_block(x, params, block_hw=32, block_q=32,
                                  compute_dtype=jnp.float32)
    out_f32 = jax.block_until_ready(out_f32)
    err_f32 = jnp.max(jnp.abs(out_f32 - ref))
    assert jnp.allclose(out_f32, ref, atol=2e-3, rtol=2e-3), \
        f"f32 mismatch: max abs err {err_f32}"

    print("KERNEL_OK")
</pallas_src>

<mosaic_0001>
module attributes {stable_mosaic.version = 11 : i64} {
  func.func @gn_stats_kernel(%arg0: i32, %arg1: i32, %arg2: memref<1x32x32xf32, #tpu.memory_space<vmem>>, %arg3: memref<1x32xf32, #tpu.memory_space<vmem>>, %arg4: memref<1x32xf32, #tpu.memory_space<vmem>>, %arg5: memref<32x32xf32, #tpu.memory_space<vmem>>, %arg6: memref<32x32xf32, #tpu.memory_space<vmem>>, %arg7: memref<1x1x32xf32, #tpu.memory_space<vmem>>, %arg8: memref<1x1x32xf32, #tpu.memory_space<vmem>>, %arg9: memref<1x32xf32, #tpu.memory_space<vmem>>, %arg10: memref<1x32xf32, #tpu.memory_space<vmem>>) attributes {dimension_semantics = [#tpu.dimension_semantics<parallel>, #tpu.dimension_semantics<arbitrary>], iteration_bounds = array<i64: 2, 2>, scalar_prefetch = 0 : i64, scratch_operands = 2 : i64, tpu.core_type = #tpu.core_type<tc>, window_params = [{transform_indices = @transform_0, window_bounds = array<i64: 1, 32, 32>}, {pipeline_mode = #tpu.pipeline_mode<synchronous>, transform_indices = @transform_1, window_bounds = array<i64: 1, 32>}, {pipeline_mode = #tpu.pipeline_mode<synchronous>, transform_indices = @transform_2, window_bounds = array<i64: 1, 32>}, {pipeline_mode = #tpu.pipeline_mode<synchronous>, transform_indices = @transform_3, window_bounds = array<i64: 32, 32>}, {pipeline_mode = #tpu.pipeline_mode<synchronous>, transform_indices = @transform_4, window_bounds = array<i64: 32, 32>}, {transform_indices = @transform_5, window_bounds = array<i64: 1, 1, 32>}, {transform_indices = @transform_6, window_bounds = array<i64: 1, 1, 32>}]} {
    %c0_i32 = arith.constant 0 : i32
    %0 = arith.cmpi eq, %arg1, %c0_i32 : i32
    %1 = arith.extui %0 : i1 to i32
    %c0_i32_0 = arith.constant 0 : i32
    %2 = arith.cmpi ne, %1, %c0_i32_0 : i32
    scf.if %2 {
      %cst_13 = arith.constant 0.000000e+00 : f32
      %19 = vector.broadcast %cst_13 : f32 to vector<1x32xf32>
      %c0_14 = arith.constant 0 : index
      %c0_15 = arith.constant 0 : index
      %20 = vector.load %arg9[%c0_14, %c0_15] : memref<1x32xf32, #tpu.memory_space<vmem>>, vector<1x32xf32>
      tpu.vector_store %arg9[%c0_14, %c0_15], %19 {strides = array<i32>} : memref<1x32xf32, #tpu.memory_space<vmem>>, vector<1x32xf32>,
      %cst_16 = arith.constant 0.000000e+00 : f32
      %21 = vector.broadcast %cst_16 : f32 to vector<1x32xf32>
      %c0_17 = arith.constant 0 : index
      %c0_18 = arith.constant 0 : index
      %22 = vector.load %arg10[%c0_17, %c0_18] : memref<1x32xf32, #tpu.memory_space<vmem>>, vector<1x32xf32>
      tpu.vector_store %arg10[%c0_17, %c0_18], %21 {strides = array<i32>} : memref<1x32xf32, #tpu.memory_space<vmem>>, vector<1x32xf32>,
    } else {
    }
    %c0 = arith.constant 0 : index
    %c0_1 = arith.constant 0 : index
    %c0_2 = arith.constant 0 : index
    %3 = vector.load %arg2[%c0, %c0_1, %c0_2] : memref<1x32x32xf32, #tpu.memory_space<vmem>>, vector<1x32x32xf32>
    %4 = vector.shape_cast %3 : vector<1x32x32xf32> to vector<32x32xf32>
    %c0_3 = arith.constant 0 : index
    %c0_4 = arith.constant 0 : index
    %5 = vector.load %arg9[%c0_3, %c0_4] : memref<1x32xf32, #tpu.memory_space<vmem>>, vector<1x32xf32>
    %cst = arith.constant dense<0.000000e+00> : vector<32xf32>
    %6 = vector.multi_reduction <add>, %4, %cst [0] : vector<32x32xf32> to vector<32xf32>
    %7 = vector.shape_cast %6 : vector<32xf32> to vector<1x32xf32>
    %8 = arith.addf %5, %7 : vector<1x32xf32>
    %c0_5 = arith.constant 0 : index
    %c0_6 = arith.constant 0 : index
    %9 = vector.load %arg9[%c0_5, %c0_6] : memref<1x32xf32, #tpu.memory_space<vmem>>, vector<1x32xf32>
    tpu.vector_store %arg9[%c0_5, %c0_6], %8 {strides = array<i32>} : memref<1x32xf32, #tpu.memory_space<vmem>>, vector<1x32xf32>,
    %c0_7 = arith.constant 0 : index
    %c0_8 = arith.constant 0 : index
    %10 = vector.load %arg10[%c0_7, %c0_8] : memref<1x32xf32, #tpu.memory_space<vmem>>, vector<1x32xf32>
    %11 = arith.mulf %4, %4 : vector<32x32xf32>
    %cst_9 = arith.constant dense<0.000000e+00> : vector<32xf32>
    %12 = vector.multi_reduction <add>, %11, %cst_9 [0] : vector<32x32xf32> to vector<32xf32>
    %13 = vector.shape_cast %12 : vector<32xf32> to vector<1x32xf32>
    %14 = arith.addf %10, %13 : vector<1x32xf32>
    %c0_10 = arith.constant 0 : index
    %c0_11 = arith.constant 0 : index
    %15 = vector.load %arg10[%c0_10, %c0_11] : memref<1x32xf32, #tpu.memory_space<vmem>>, vector<1x32xf32>
    tpu.vector_store %arg10[%c0_10, %c0_11], %14 {strides = array<i32>} : memref<1x32xf32, #tpu.memory_space<vmem>>, vector<1x32xf32>,
    %c1_i32 = arith.constant 1 : i32
    %16 = arith.cmpi eq, %arg1, %c1_i32 : i32
    %17 = arith.extui %16 : i1 to i32
    %c0_i32_12 = arith.constant 0 : i32
    %18 = arith.cmpi ne, %17, %c0_i32_12 : i32
    scf.if %18 {
      %c0_13 = arith.constant 0 : index
      %c0_14 = arith.constant 0 : index
      %19 = vector.load %arg9[%c0_13, %c0_14] : memref<1x32xf32, #tpu.memory_space<vmem>>, vector<1x32xf32>
      %c0_15 = arith.constant 0 : index
      %c0_16 = arith.constant 0 : index
      %20 = vector.load %arg5[%c0_15, %c0_16] : memref<32x32xf32, #tpu.memory_space<vmem>>, vector<32x32xf32>
      %cst_17 = arith.constant dense<0.000000e+00> : vector<1x32xf32>
      %21 = tpu.matmul %19, %20, %cst_17 {dimension_numbers = #tpu.dot_dimension_numbers<[1], [0], [0], [1], [0, 0, 1, 1], [], []>} : vector<1x32xf32>, vector<32x32xf32>, vector<1x32xf32> -> vector<1x32xf32>
      %cst_18 = arith.constant 1.562500e-02 : f32
      %22 = vector.broadcast %cst_18 : f32 to vector<1x32xf32>
      %23 = arith.mulf %21, %22 : vector<1x32xf32>
      %c0_19 = arith.constant 0 : index
      %c0_20 = arith.constant 0 : index
      %24 = vector.load %arg10[%c0_19, %c0_20] : memref<1x32xf32, #tpu.memory_space<vmem>>, vector<1x32xf32>
      %c0_21 = arith.constant 0 : index
      %c0_22 = arith.constant 0 : index
      %25 = vector.load %arg5[%c0_21, %c0_22] : memref<32x32xf32, #tpu.memory_space<vmem>>, vector<32x32xf32>
      %cst_23 = arith.constant dense<0.000000e+00> : vector<1x32xf32>
      %26 = tpu.matmul %24, %25, %cst_23 {dimension_numbers = #tpu.dot_dimension_numbers<[1], [0], [0], [1], [0, 0, 1, 1], [], []>} : vector<1x32xf32>, vector<32x32xf32>, vector<1x32xf32> -> vector<1x32xf32>
      %cst_24 = arith.constant 1.562500e-02 : f32
      %27 = vector.broadcast %cst_24 : f32 to vector<1x32xf32>
      %28 = arith.mulf %26, %27 : vector<1x32xf32>
      %29 = arith.mulf %23, %23 : vector<1x32xf32>
      %30 = arith.subf %28, %29 : vector<1x32xf32>
      %cst_25 = arith.constant 9.99999974E-6 : f32
      %31 = vector.broadcast %cst_25 : f32 to vector<1x32xf32>
      %32 = arith.addf %30, %31 : vector<1x32xf32>
      %33 = math.rsqrt %32 : vector<1x32xf32>
      %c0_26 = arith.constant 0 : index
      %c0_27 = arith.constant 0 : index
      %34 = vector.load %arg6[%c0_26, %c0_27] : memref<32x32xf32, #tpu.memory_space<vmem>>, vector<32x32xf32>
      %cst_28 = arith.constant dense<0.000000e+00> : vector<1x32xf32>
      %35 = tpu.matmul %23, %34, %cst_28 {dimension_numbers = #tpu.dot_dimension_numbers<[1], [0], [0], [1], [0, 0, 1, 1], [], []>} : vector<1x32xf32>, vector<32x32xf32>, vector<1x32xf32> -> vector<1x32xf32>
      %c0_29 = arith.constant 0 : index
      %c0_30 = arith.constant 0 : index
      %36 = vector.load %arg6[%c0_29, %c0_30] : memref<32x32xf32, #tpu.memory_space<vmem>>, vector<32x32xf32>
      %cst_31 = arith.constant dense<0.000000e+00> : vector<1x32xf32>
      %37 = tpu.matmul %33, %36, %cst_31 {dimension_numbers = #tpu.dot_dimension_numbers<[1], [0], [0], [1], [0, 0, 1, 1], [], []>} : vector<1x32xf32>, vector<32x32xf32>, vector<1x32xf32> -> vector<1x32xf32>
      %c0_32 = arith.constant 0 : index
      %c0_33 = arith.constant 0 : index
      %38 = vector.load %arg3[%c0_32, %c0_33] : memref<1x32xf32, #tpu.memory_space<vmem>>, vector<1x32xf32>
      %39 = arith.mulf %38, %37 : vector<1x32xf32>
      %c0_34 = arith.constant 0 : index
      %c0_35 = arith.constant 0 : index
      %40 = vector.load %arg4[%c0_34, %c0_35] : memref<1x32xf32, #tpu.memory_space<vmem>>, vector<1x32xf32>
      %41 = arith.mulf %35, %39 : vector<1x32xf32>
      %42 = arith.subf %40, %41 : vector<1x32xf32>
      %c0_36 = arith.constant 0 : index
      %c0_37 = arith.constant 0 : index
      %c0_38 = arith.constant 0 : index
      %43 = vector.load %arg7[%c0_36, %c0_37, %c0_38] : memref<1x1x32xf32, #tpu.memory_space<vmem>>, vector<1x1x32xf32>
      %44 = vector.shape_cast %43 : vector<1x1x32xf32> to vector<1x32xf32>
      %45 = vector.shape_cast %39 : vector<1x32xf32> to vector<1x1x32xf32>
      tpu.vector_store %arg7[%c0_36, %c0_37, %c0_38], %45 {strides = array<i32>} : memref<1x1x32xf32, #tpu.memory_space<vmem>>, vector<1x1x32xf32>,
      %c0_39 = arith.constant 0 : index
      %c0_40 = arith.constant 0 : index
      %c0_41 = arith.constant 0 : index
      %46 = vector.load %arg8[%c0_39, %c0_40, %c0_41] : memref<1x1x32xf32, #tpu.memory_space<vmem>>, vector<1x1x32xf32>
      %47 = vector.shape_cast %46 : vector<1x1x32xf32> to vector<1x32xf32>
      %48 = vector.shape_cast %42 : vector<1x32xf32> to vector<1x1x32xf32>
      tpu.vector_store %arg8[%c0_39, %c0_40, %c0_41], %48 {strides = array<i32>} : memref<1x1x32xf32, #tpu.memory_space<vmem>>, vector<1x1x32xf32>,
    } else {
    }
    return
  }
  func.func @transform_0(%arg0: i32, %arg1: i32) -> (i32, i32, i32) {
    %c0_i32 = arith.constant 0 : i32
    %c0_i32_0 = arith.constant 0 : i32
    return %arg0, %arg1, %c0_i32 : i32, i32, i32
  }
  func.func @transform_1(%arg0: i32, %arg1: i32) -> (i32, i32) {
    %c0_i32 = arith.constant 0 : i32
    %c0_i32_0 = arith.constant 0 : i32
    %c0_i32_1 = arith.constant 0 : i32
    return %c0_i32, %c0_i32_0 : i32, i32
  }
  func.func @transform_2(%arg0: i32, %arg1: i32) -> (i32, i32) {
    %c0_i32 = arith.constant 0 : i32
    %c0_i32_0 = arith.constant 0 : i32
    %c0_i32_1 = arith.constant 0 : i32
    return %c0_i32, %c0_i32_0 : i32, i32
  }
  func.func @transform_3(%arg0: i32, %arg1: i32) -> (i32, i32) {
    %c0_i32 = arith.constant 0 : i32
    %c0_i32_0 = arith.constant 0 : i32
    %c0_i32_1 = arith.constant 0 : i32
    return %c0_i32, %c0_i32_0 : i32, i32
  }
  func.func @transform_4(%arg0: i32, %arg1: i32) -> (i32, i32) {
    %c0_i32 = arith.constant 0 : i32
    %c0_i32_0 = arith.constant 0 : i32
    %c0_i32_1 = arith.constant 0 : i32
    return %c0_i32, %c0_i32_0 : i32, i32
  }
  func.func @transform_5(%arg0: i32, %arg1: i32) -> (i32, i32, i32) {
    %c0_i32 = arith.constant 0 : i32
    %c0_i32_0 = arith.constant 0 : i32
    %c0_i32_1 = arith.constant 0 : i32
    return %arg0, %c0_i32, %c0_i32_0 : i32, i32, i32
  }
  func.func @transform_6(%arg0: i32, %arg1: i32) -> (i32, i32, i32) {
    %c0_i32 = arith.constant 0 : i32
    %c0_i32_0 = arith.constant 0 : i32
    %c0_i32_1 = arith.constant 0 : i32
    return %arg0, %c0_i32, %c0_i32_0 : i32, i32, i32
  }
}

</mosaic_0001>

<bundles_post_ra>
// kernel: tpu_custom_call.1
= control target key start
LH: loop header
LB: loop body
LE: loop exit
PB: predicated region body
PF: predicated region fallthrough
CT: control target
= control target key end

     0   :  { %s1361_s0 = inlined_call_operand.vmem [shape: f32[2,64,32], index: 0, kind: input, shape index: {}]   ;;  %s1362_s1 = inlined_call_operand.vmem [shape: f32[1,32], index: 1, kind: input, shape index: {}]   ;;  %s1363_s2 = inlined_call_operand.vmem [shape: f32[1,32], index: 2, kind: input, shape index: {}]   ;;  %s1364_s3 = inlined_call_operand.vmem [shape: f32[32,32], index: 3, kind: input, shape index: {}]   ;;  %s1365_s4 = inlined_call_operand.vmem [shape: f32[32,32], index: 4, kind: input, shape index: {}]   ;;  %s1366_s5 = inlined_call_operand.hbm [shape: f32[2,1,32], index: 5, kind: output, shape index: {0}]   ;;  %s1367_s6 = inlined_call_operand.hbm [shape: f32[2,1,32], index: 6, kind: output, shape index: {1}]  }
   0x1   :  { %1370 = sst [smem:[#allocation10_spill]] %s1361_s0 }
   0x2   :  { %1371 = sst [smem:[#allocation11_spill]] %s1362_s1 }
   0x3   :  { %1372 = sst [smem:[#allocation12_spill]] %s1363_s2 }
   0x4   :  { %12 = vsyncpa [#allocation5], 0 }
   0x5   :  { %14 = vsyncpa [#allocation5 + $0x1], 0 }
   0x6   :  { %15 = vsyncpa [#allocation7], 0 }
   0x7   :  { %17 = vsyncpa [#allocation7 + $0x1], 0  ;;  %s1142_s21 = smov 0   ;;  %s1144_s22 = smov 0  }
   0x8   :  { %s1146_s23 = smov 0   ;;  %s1148_s24 = smov 0  }
   0x9   :  { %s1150_s25 = smov 0   ;;  %s1152_s26 = smov 0  }
   0xa   :  { %s1154_s27 = smov 0   ;;  %s1156_s28 = smov 0  }
   0xb LB: > { %s785_s29 = sadd.s32 4294967295, %s1099_s28   ;;  %s786_s30 = sadd.s32 4294967294, %s1099_s28   ;;  %s1099_s28 = sphi %s1156_s28, %s23_s28   ;;  %s1095_s27 = sphi %s1154_s27, %s1386_s27   ;;  %s1091_s26 = sphi %s1152_s26, %s1385_s26   ;;  %s1087_s25 = sphi %s1150_s25, %s1384_s25   ;;  %s1083_s24 = sphi %s1148_s24, %s1383_s24   ;;  %s1079_s23 = sphi %s1146_s23, %s1382_s23   ;;  %s1075_s22 = sphi %s1144_s22, %s1381_s22   ;;  %s1071_s21 = sphi %s1142_s21, %s1380_s21  }
   0xc   : > { %s32_s7 = sadd.s32 1, %s1091_s26  ;;  %s35_s8 = sadd.s32 1, %s1095_s27 }
   0xd   : > { %p33_p0 = scmp.ge.s32.totalorder %s32_s7, 2  ;;  %p164_p1 = scmp.ne.s32.totalorder %s1079_s23, %s1075_s22 }
   0xe   : > { %p165_p2 = scmp.eq.s32.totalorder %s785_s29, 3  ;;  %p170_p4 = scmp.ne.s32.totalorder %s1075_s22, %s1071_s21 }
   0xf   : > { %s1388_s7 = smov (%p33_p0, %s32_s7), 0  ;;  %s1390_s8 = smov (!%p33_p0, %s35_s8), %s1095_s27 }
  0x10   : > { %p1191_p3 = por %p165_p2, %p164_p1  ;;  %p37_p5 = scmp.ge.s32.totalorder %s1390_s8, 2 }
  0x11   : > { %p171_p6 = scmp.eq.s32.totalorder %s786_s30, 3  ;;  %p789_p7 = scmp.ge.s32.totalorder %s1099_s28, 1 }
  0x12   : > { %p240_p8 = scmp.lt.s32.totalorder %s1099_s28, 5  ;;  %s1392_s8 = smov (%p37_p5, %s1390_s8), 0 }
  0x13   : > { %p1201_p9 = por %p171_p6, %p170_p4  ;;  %s151_s11 = ssub.s32 %s1095_s27, %s1392_s8 }
  0x14   : > { %p241_p10 = pnand %p789_p7, %p240_p8  ;;  %s154_s12 = sadd.s32 1, %s1079_s23 }
  0x15   : > { %p152_p11 = scmp.eq.s32.totalorder %s151_s11, 0  ;;  %s1212_s14 = sand.u32 (!%p241_p10), 1, %s1075_s22  }
  0x16   : > { %244 = sbr.rel (%p241_p10) target bundleno = 567 (0x237), region = 40  ;;  %s790_s15 = sshll.u32 (!%p241_p10), %s1083_s24, 2 }
  0x17   : > { %s1209_s13 = scalar_select %p152_p11, %s1079_s23, %s154_s12  }
  0x18   : > { %p278_p12 = scmp.lt.s32.totalorder (!%p241_p10), %s1087_s25, 1  ;;  %p280_p13 = scmp.lt.s32.totalorder (!%p241_p10), %s790_s15, 7 }
  0x19   : > { %s1375_s0 = sld [smem:[#allocation10_spill]] (!%p241_p10)  ;;  %s270_s11 = scalar_lea.vmem (!%p241_p10), [#allocation4], %s1212_s14 }
  0x1a   : > { %s1368_s12 = scalar_lea.vmem (!%p241_p10), [#allocation6], %s1212_s14  ;;  %p793_p0 = scmp.ne.s32.totalorder (!%p241_p10), %s1083_s24, 0 }
  0x1d   : > { %s279_s16 = scalar_select %p278_p12, %s1087_s25, 1 }
  0x1e   : > { %s1394_s15 = smov (!%p280_p13, %s790_s15), 7  ;;  %290 = sbr.rel (%p793_p0) target bundleno = 37 (0x25), region = 44 }
  0x1f   : > { %s791_s17 = sshll.u32 %s279_s16, 3  ;;  %vm291_vm0 = vcmask (!%p793_p0), 253952   ;;  %v1101_v0 = vmov (!%p793_p0), 0.0  }
  0x20   : > { %s283_s18 = sadd.s32 %s791_s17, %s1394_s15  ;;  %292 = vst.msk [vmem:[#allocation2] sm:$0x1] (!%p793_p0), %vm291_vm0, %v1101_v0  ;;  %293 = vst.msk [vmem:[#allocation3] sm:$0x1] (!%p793_p0), %vm291_vm0, %v1101_v0 }
  0x21   : > { %s792_s19 = sshll.u32 %s283_s18, 3 }
  0x22   : > { %s285_s30 = scalar_lea.vmem %s1375_s0, %s792_s19 }
  0x25 PF: > { %v294_v1 = vld [vmem:[%s285_s30] sm:$0xff]  ;;  %v295_v2 = vld [vmem:[%s285_s30 + $0x8] sm:$0xff]  ;;  %v296_v3 = vld [vmem:[%s285_s30 + $0x10] sm:$0xff]  ;;  %vm299_vm1 = vcmask 261120   ;;  %vm314_vm2 = vcmask 253952   ;;  %p794_p1 = scmp.ne.s32.totalorder %s1083_s24, 1 }
  0x26   : > { %v297_v4 = vld [vmem:[%s285_s30 + $0x18] sm:$0xff]  ;;  %v300_v5 = vsel %vm299_vm1, %v294_v1, 0.0  ;;  %v301_v6 = vsel %vm299_vm1, %v295_v2, 0.0  ;;  %v303_v7 = vsel %vm299_vm1, %v296_v3, 0.0  ;;  %v317_v8 = vmul.f32 %v294_v1, %v294_v1  ;;  %v341_v39 = vld [vmem:[%s1364_s3] sm:$0xff] (!%p794_p1)  ;;  %v342_v40 = vld [vmem:[%s1364_s3 + $0x8] sm:$0xff] (!%p794_p1) }
  0x27   : > { %v302_v9 = vadd.f32 %v301_v6, %v300_v5  ;;  %v318_v10 = vmul.f32 %v295_v2, %v295_v2  ;;  %v319_v11 = vmul.f32 %v296_v3, %v296_v3  ;;  %v305_v12 = vsel %vm299_vm1, %v297_v4, 0.0  ;;  %v298_v31 = vld [vmem:[#allocation2] sm:$0x1]  ;;  %v316_v36 = vld [vmem:[#allocation3] sm:$0x1]  ;;  %v343_v41 = vld [vmem:[%s1364_s3 + $0x10] sm:$0xff] (!%p794_p1) }
  0x28   : > { %v320_v13 = vmul.f32 %v297_v4, %v297_v4  ;;  %v321_v14 = vsel %vm299_vm1, %v317_v8, 0.0  ;;  %v1102_v42 = vmov (!%p794_p1), 0.0|0.0   ;;  %v868_v43 = vpack.c.bf16 (!%p794_p1), %v342_v40, %v341_v39  ;;  %v344_v44 = vld [vmem:[%s1364_s3 + $0x18] sm:$0xff] (!%p794_p1)  ;;  %v498_v47 = vld [vmem:[%s1365_s4] sm:$0xff] (!%p794_p1)  ;;  %v499_v48 = vld [vmem:[%s1365_s4 + $0x8] sm:$0xff] (!%p794_p1)  ;;  %s1376_s1 = sld [smem:[#allocation11_spill]] (!%p794_p1) }
  0x29   : > { %v304_v15 = vadd.f32 %v303_v7, %v302_v9  ;;  %v322_v16 = vsel %vm299_vm1, %v318_v10, 0.0  ;;  %v324_v17 = vsel %vm299_vm1, %v319_v11, 0.0  ;;  %867 = vmatprep.subr.bf16.mxu0 (!%p794_p1), %v1102_v42  ;;  %873 = vmatprep.subr.bf16.mxu1 (!%p794_p1), %v1102_v42  ;;  %vm1103_vm3 = vmmov (!%p794_p1), 0   ;;  %v500_v52 = vld [vmem:[%s1365_s4 + $0x10] sm:$0xff] (!%p794_p1)  ;;  %v501_v53 = vld [vmem:[%s1365_s4 + $0x18] sm:$0xff] (!%p794_p1)  ;;  %s1377_s2 = sld [smem:[#allocation12_spill]] (!%p794_p1) }
  0x2a   : > { %v323_v18 = vadd.f32 %v322_v16, %v321_v14  ;;  %v326_v20 = vsel %vm299_vm1, %v320_v13, 0.0  ;;  %v1104_v45 = vmov (!%p794_p1), 0.0   ;;  %869 = vmatpush3.bf16.msra.mxu0 (!%p794_p1), %v868_v43  ;;  %875 = vmatpush3.bf16.msra.mxu1 (!%p794_p1), %v868_v43  ;;  %v871_v46 = vpack.c.bf16 (!%p794_p1), %v344_v44, %v343_v41 }
  0x2b   : > { %v306_v19 = vadd.f32 %v305_v12, %v304_v15  ;;  %831 = vmatprep.mubr.msk.f32.mxu0 (!%p794_p1), %vm1103_vm3, %v1104_v45  ;;  %842 = vmatprep.mubr.msk.f32.mxu1 (!%p794_p1), %vm1103_vm3, %v1104_v45  ;;  %v880_v51 = vpack.c.bf16 (!%p794_p1), %v499_v48, %v498_v47  ;;  %v883_v54 = vpack.c.bf16 (!%p794_p1), %v501_v53, %v500_v52 }
  0x2c   : > { %v325_v21 = vadd.f32 %v324_v17, %v323_v18  ;;  %870 = vmatprep.subr.bf16.mxu0 (!%p794_p1), %v1102_v42  ;;  %876 = vmatprep.subr.bf16.mxu1 (!%p794_p1), %v1102_v42 }
  0x2d   : > { %v307_v22 = vrot.slane %v306_v19, 4 }
  0x2e   : > { %v327_v23 = vadd.f32 %v326_v20, %v325_v21  ;;  %872 = vmatpush3.bf16.msra.mxu0 (!%p794_p1), %v871_v46  ;;  %878 = vmatpush3.bf16.msra.mxu1 (!%p794_p1), %v871_v46  ;;  %v648_v3 = vld [vmem:[%s1376_s1] sm:$0x1] (!%p794_p1) }
  0x2f   : > { %v308_v24 = vadd.f32 %v307_v22, %v306_v19  ;;  %879 = vmatprep.subr.bf16.mxu0 (!%p794_p1), %v1102_v42  ;;  %885 = vmatprep.subr.bf16.mxu1 (!%p794_p1), %v1102_v42  ;;  %v650_v7 = vld [vmem:[%s1377_s2] sm:$0x1] (!%p794_p1) }
  0x30   : > { %v328_v25 = vrot.slane %v327_v23, 4 }
  0x31   : > { %v309_v26 = vrot.slane %v308_v24, 2 }
  0x32   : > { %v329_v27 = vadd.f32 %v328_v25, %v327_v23 }
  0x33   : > { %v310_v28 = vadd.f32 %v309_v26, %v308_v24 }
  0x34   : > { %v330_v29 = vrot.slane %v329_v27, 2 }
  0x35   : > { %v311_v30 = vrot.slane %v310_v28, 1 }
  0x36   : > { %v331_v32 = vadd.f32 %v330_v29, %v329_v27 }
  0x37   : > { %v312_v33 = vadd.f32 %v311_v30, %v310_v28 }
  0x38   : > { %v332_v34 = vrot.slane %v331_v32, 1  ;;  %339 = sbr.rel (%p794_p1) target bundleno = 518 (0x206), region = 48 }
  0x39   : > { %v313_v35 = vadd.f32 %v312_v33, %v298_v31 }
  0x3a   : > { %v333_v37 = vadd.f32 %v332_v34, %v331_v32 }
  0x3b   : > { %315 = vst.msk [vmem:[#allocation2] sm:$0x1] %vm314_vm2, %v313_v35 }
  0x3c   : > { %v334_v38 = vadd.f32 %v333_v37, %v316_v36 }
  0x3e   : > { %335 = vst.msk [vmem:[#allocation3] sm:$0x1] %vm314_vm2, %v334_v38 }
  0x42   : > { %v340_v49 = vld [vmem:[#allocation2] sm:$0x1] }
  0x43   : > { %832 = vmatmul.mubr.msk.f32.vlgmr.msra.gmra.mrb[0].mxu0 %vm299_vm1, %v340_v49 }
  0x44   : > { %881 = vmatpush3.bf16.msra.mxu0 %v880_v51  ;;  %853 = vmatprep.mubr.msk.f32.mxu0 %vm1103_vm3, %v1104_v45 }
  0x45   : > { %v419_v50 = vld [vmem:[#allocation3] sm:$0x1]  ;;  %882 = vmatprep.subr.bf16.mxu0 %v1102_v42 }
  0x46   : > { %843 = vmatmul.mubr.msk.f32.vlgmr.msra.gmra.mrb[0].mxu1 %vm299_vm1, %v419_v50 }
  0x47   : > { %887 = vmatpush3.bf16.msra.mxu1 %v880_v51  ;;  %864 = vmatprep.mubr.msk.f32.mxu1 %vm1103_vm3, %v1104_v45 }
  0x48   : > { %888 = vmatprep.subr.bf16.mxu1 %v1102_v42  ;;  %884 = vmatpush3.bf16.msra.mxu0 %v883_v54 }
  0x4b   : > { %890 = vmatpush3.bf16.msra.mxu1 %v883_v54 }
 0x116   : > { %v414_v55 = vpop.f32.mrb[0].mxu0 }
 0x117   : > { %v418_v57 = vmul.f32 0.015625, %v414_v55  ;;  %v833_v58 = vpop.f32.mrb[1].mxu0 }
 0x119   : > { %v489_v56 = vpop.f32.mrb[0].mxu1  ;;  %v494_v61 = vmul.f32 %v418_v57, %v418_v57  ;;  %854 = vmatmul.mubr.msk.f32.vlgmr.msra.gmra.mrb[2].mxu0 %vm299_vm1, %v418_v57 }
 0x11a   : > { %v493_v59 = vmul.f32 0.015625, %v489_v56  ;;  %v844_v60 = vpop.f32.mrb[1].mxu1 }
 0x11c   : > { %v495_v62 = vsub.f32 %v493_v59, %v494_v61 }
 0x11e   : > { %v496_v63 = vadd.f32 1e-05, %v495_v62 }
 0x120   : > { %971 = vrsqrt.f32 %v496_v63 }
 0x12a   : > { %v972_v0 = vpop.eup %971 }
 0x12b   : > { %865 = vmatmul.mubr.msk.f32.vlgmr.msra.gmra.mrb[2].mxu1 %vm299_vm1, %v972_v0 }
 0x1ec   : > { %v571_v1 = vpop.f32.mrb[2].mxu0 }
 0x1ed   : > { %v855_v2 = vpop.f32.mrb[3].mxu0 }
 0x1fe   : > { %v644_v4 = vpop.f32.mrb[2].mxu1 }
 0x1ff   : > { %v649_v5 = vmul.f32 %v648_v3, %v644_v4  ;;  %v866_v6 = vpop.f32.mrb[3].mxu1 }
 0x201   : > { %v651_v8 = vmul.f32 %v649_v5, %v571_v1  ;;  %653 = vst.msk [vmem:[%s270_s11] sm:$0x1] %vm314_vm2, %v649_v5 }
 0x203   : > { %v652_v9 = vsub.f32 %v650_v7, %v651_v8 }
 0x205   : > { %654 = vst.msk [vmem:[%s1368_s12] sm:$0x1] %vm314_vm2, %v652_v9 }
 0x206 PF: > { %s1369_s17 = sshll.u32 %s1087_s25, 4  ;;  %s672_s29 = sshll.u32 %s270_s11, 4  ;;  %s673_s29 = int_to_ptr.vmem [resolvable:$true] %s672_s29 }
 0x207   : > { %s1284_s20 = scalar_lea.hbm %s1366_s5, %s1369_s17  ;;  %s656_s30 = scalar_lea.sflag [#allocation5], %s1212_s14 }
 0x208   : > { %s973_s24 = scalar_lea.vmem %s673_s29, 16  ;;  %s1105_s15 = smov [#allocation4]  }
 0x209   : > { %p974_p2 = scmp.ne.s32.totalorder %s673_s29, %s973_s24  ;;  %s977_s16 = sshll.u32 %s1105_s15, 4  ;;  %s978_s16 = int_to_ptr.vmem [resolvable:$false] %s977_s16 }
 0x20a   : > { %s979_s12 = scalar_lea.vmem %s978_s16, 32  ;;  %p980_p6 = scmp.lt.s32.totalorder %s673_s29, %s978_s16 }
 0x20b   : > { %p975_p4 = pnand %p974_p2, %p1191_p3  ;;  %p981_p7 = scmp.lt.s32.totalorder %s979_s12, %s973_s24 }
 0x20d   : > { %p976_p5 = pneg %p975_p4  ;;  %p982_p8 = por %p981_p7, %p980_p6 }
 0x20f   : > { %p983_p10 = pnand %p982_p8, %p976_p5 }
 0x211   : > { %986 = shalt.err (!%p983_p10)
}
 0x212   : > { %s987_s11 = scalar_lea.hbm %s1284_s20, 16  ;;  %s991_s15 = scalar_lea.hbm %s1366_s5, 32 }
 0x213   : > { %p988_p11 = scmp.ne.s32.totalorder %s1284_s20, %s987_s11  ;;  %p992_p0 = scmp.lt.u32.totalorder %s1284_s20, %s1366_s5 }
 0x214   : > { %p993_p1 = scmp.lt.u32.totalorder %s991_s15, %s987_s11  ;;  %p995_p4 = scmp.lt.u32.totalorder %s987_s11, %s1284_s20 }
 0x215   : > { %p989_p12 = pnand %p988_p11, %p1191_p3 }
 0x216   : > { %p994_p2 = por %p993_p1, %p992_p0 }
 0x217   : > { %p990_p13 = pneg %p989_p12 }
 0x218   : > { %p996_p5 = por %p995_p4, %p994_p2 }
 0x21a   : > { %p997_p6 = pnand %p996_p5, %p990_p13 }
 0x21c   : > { %1000 = shalt.err (!%p997_p6)
}
 0x21d   : > { %891 = dma.vmem_to_hbm [thread:$0]  (%p1191_p3), %s673_s29, 16, %s1284_s20, %s656_s30  }
 0x21e   : > { %s1378_s12 = sshll.u32 %s1087_s25, 4  ;;  %s1379_s19 = scalar_lea.vmem [#allocation6], %s1212_s14 }
 0x21f   : > { %s1311_s17 = scalar_lea.hbm %s1367_s6, %s1378_s12  ;;  %s685_s15 = sshll.u32 %s1379_s19, 4  ;;  %s686_s15 = int_to_ptr.vmem [resolvable:$true] %s685_s15 }
 0x220   : > { %s660_s11 = scalar_lea.sflag [#allocation7], %s1212_s14  ;;  %s1001_s16 = scalar_lea.vmem %s686_s15, 16 }
 0x221   : > { %p1002_p7 = scmp.ne.s32.totalorder %s686_s15, %s1001_s16  ;;  %s1106_s0 = smov [#allocation6]  }
 0x222   : > { %s1005_s1 = sshll.u32 %s1106_s0, 4  ;;  %s1006_s1 = int_to_ptr.vmem [resolvable:$false] %s1005_s1 }
 0x223   : > { %p1003_p8 = pnand %p1002_p7, %p1191_p3  ;;  %s1007_s2 = scalar_lea.vmem %s1006_s1, 32 }
 0x224   : > { %p1008_p11 = scmp.lt.s32.totalorder %s686_s15, %s1006_s1  ;;  %p1009_p12 = scmp.lt.s32.totalorder %s1007_s2, %s1001_s16 }
 0x225   : > { %p1004_p10 = pneg %p1003_p8 }
 0x226   : > { %p1010_p13 = por %p1009_p12, %p1008_p11 }
 0x228   : > { %p1011_p0 = pnand %p1010_p13, %p1004_p10 }
 0x22a   : > { %1014 = shalt.err (!%p1011_p0)
}
 0x22b   : > { %s1015_s25 = scalar_lea.hbm %s1311_s17, 16  ;;  %s1019_s0 = scalar_lea.hbm %s1367_s6, 32 }
 0x22c   : > { %p1016_p1 = scmp.ne.s32.totalorder %s1311_s17, %s1015_s25  ;;  %p1020_p5 = scmp.lt.u32.totalorder %s1311_s17, %s1367_s6 }
 0x22d   : > { %p1021_p6 = scmp.lt.u32.totalorder %s1019_s0, %s1015_s25  ;;  %p1023_p8 = scmp.lt.u32.totalorder %s1015_s25, %s1311_s17 }
 0x22e   : > { %p1017_p2 = pnand %p1016_p1, %p1191_p3 }
 0x22f   : > { %p1022_p7 = por %p1021_p6, %p1020_p5 }
 0x230   : > { %p1018_p4 = pneg %p1017_p2 }
 0x231   : > { %p1024_p10 = por %p1023_p8, %p1022_p7 }
 0x233   : > { %p1025_p11 = pnand %p1024_p10, %p1018_p4 }
 0x235   : > { %1028 = shalt.err (!%p1025_p11)
}
 0x236   : > { %892 = dma.vmem_to_hbm [thread:$0]  (%p1191_p3), %s686_s15, 16, %s1311_s17, %s660_s11  }
 0x237 PF: > { %p902_p12 = scmp.ge.s32.totalorder %s1099_s28, 2  ;;  %s697_s2 = sand.u32 1, %s1071_s21  }
 0x238   : > { %s698_s30 = scalar_lea.sflag [#allocation5], %s697_s2 }
 0x239   : > { %p896_p13 = pnand %p902_p12, %p1201_p9 }
 0x23b   : > { %1062 = dma.done.wait (!%p896_p13), %s698_s30, 16  }
 0x23c   : > { %1064 = vsyncadd (!%p896_p13), %s698_s30, 4294967280  ;;  %s706_s12 = scalar_lea.sflag [#allocation7], %s697_s2 }
 0x23d   : > { %1066 = dma.done.wait (!%p896_p13), %s706_s12, 16  }
 0x23e   : > { %1068 = vsyncadd (!%p896_p13), %s706_s12, 4294967280  ;;  %s23_s28 = sadd.s32 1, %s1099_s28   ;;  %s1380_s21 = smov %s1075_s22 }
 0x23f   : > { %p20_p0 = scmp.ge.s32.totalorder %s23_s28, 6   ;;  %s1381_s22 = smov %s1079_s23 }
 0x240   : > { %s1382_s23 = smov %s1209_s13  ;;  %s1383_s24 = smov %s1091_s26 }
 0x241   : > { %s1384_s25 = smov %s1095_s27  ;;  %s1385_s26 = smov %s1388_s7 }
 0x242   : > { %s1386_s27 = smov %s1392_s8  ;;  %22 = sbr.rel (!%p20_p0) target bundleno = 11 (0xb), region = 100 }
 0x249   :  { %710 = vsyncpa [#allocation5], 1 }
 0x24a   :  { %712 = vsyncpa [#allocation5 + $0x1], 1 }
 0x24b   :  { %713 = vsyncpa [#allocation7], 1 }
 0x24c   :  { %715 = vsyncpa [#allocation7 + $0x1], 1 }

</bundles_post_ra>
